<compile_context>
chip_gen: v5e
topology: v5e:2x2
jax: 0.10.0
libtpu: 0.0.40
codegen_flags: <defaults>
</compile_context>

<pallas_src>
import math

import jax
import jax.numpy as jnp
from jax.experimental import pallas as pl
from jax.experimental.pallas import tpu as pltpu


def _build_pe(d_model: int, max_len: int) -> jnp.ndarray:
    """Deterministic buffer construction, identical to the torch __init__ for
    even d_model (and fixed for the odd-d_model latent shape bug)."""
    position = jnp.arange(0, max_len, dtype=jnp.float32)[:, None]            # (L, 1)
    div_term = jnp.exp(
        jnp.arange(0, d_model, 2, dtype=jnp.float32) * (-math.log(10000.0) / d_model)
    )                                                                         # (ceil(D/2),)
    pe = jnp.zeros((max_len, d_model), dtype=jnp.float32)
    pe = pe.at[:, 0::2].set(jnp.sin(position * div_term))
    pe = pe.at[:, 1::2].set(jnp.cos(position * div_term[: d_model // 2]))
    return pe[None, :, :]                                                     # (1, L, D)


def _add_pe_kernel(x_ref, pe_ref, o_ref):
    # Pure elementwise hot path; pe block has leading dim 1 and broadcasts
    # over the (possibly >1) batch rows packed into the x/out block.
    o_ref[...] = (x_ref[...] + pe_ref[...]).astype(o_ref.dtype)


def _pick_lane_width(total: int, d: int) -> int:
    """Largest lane-dense width (multiple of 128) that divides S*D; fall back
    to the raw feature dim (masked stores) if none divides."""
    for cand in (512, 256, 128):
        if total % cand == 0:
            return cand
    return d


def positional_encoding_forward(
    x: jnp.ndarray,
    pe: jnp.ndarray,
    *,
    block_bytes: int = 2 * 1024 * 1024,
) -> jnp.ndarray:
    """x: (B, S, D), pe: (1, max_len, D) -> (B, S, D)."""
    B, S, D = x.shape
    assert pe.ndim == 3 and pe.shape[0] == 1 and pe.shape[2] == D and pe.shape[1] >= S

    # --- lane-dense repacking of the (S, D) slab ------------------------------
    total = S * D
    L = _pick_lane_width(total, D)
    if L == D:
        R = S
        x_packed = x                       # no repack possible; keep original layout
        pe_packed = pe[:, :S, :]
    else:
        R = total // L
        x_packed = x.reshape(B, R, L)
        # pe[:, :S, :] is a contiguous leading-axis slice, so the reshape to the
        # same packed layout keeps exact element alignment with x_packed.
        pe_packed = pe[:, :S, :].reshape(1, R, L)

    itemsize = jnp.dtype(x.dtype).itemsize
    rows_per_block_target = max(1, block_bytes // (L * itemsize))

    # --- choose (batch tile, row tile) ----------------------------------------
    if R <= rows_per_block_target:
        # Per-batch slab is small: fold several batches into one block so tiny
        # inputs become a single (or few) grid step(s).
        tR = R
        tB_cap = max(1, min(B, rows_per_block_target // max(R, 1)))
        tB = 1
        for cand in range(tB_cap, 0, -1):   # largest divisor of B <= cap
            if B % cand == 0:
                tB = cand
                break
    else:
        # Realistic shapes: one batch element per block, row-tiled.
        tB = 1
        tR = min(R, max(8, (rows_per_block_target // 8) * 8))  # multiple of 8 or == R

    grid = (pl.cdiv(R, tR), pl.cdiv(B, tB))   # rows outer, batch inner -> pe stays resident

    x_spec = pl.BlockSpec((tB, tR, L), lambda r, b: (b, r, 0))
    pe_spec = pl.BlockSpec((1, tR, L), lambda r, b: (0, r, 0))   # independent of batch axis
    out_spec = pl.BlockSpec((tB, tR, L), lambda r, b: (b, r, 0))

    # Alias x -> out only when x_packed is a fresh intermediate (safe to donate).
    io_aliases = {0: 0} if x_packed is not x else {}

    out_packed = pl.pallas_call(
        _add_pe_kernel,
        out_shape=jax.ShapeDtypeStruct((B, R, L), x.dtype),
        grid_spec=pltpu.PrefetchScalarGridSpec(
            num_scalar_prefetch=0,
            grid=grid,
            in_specs=[x_spec, pe_spec],
            out_specs=out_spec,
        ),
        compiler_params=pltpu.CompilerParams(
            dimension_semantics=("parallel", "parallel"),
        ),
        input_output_aliases=io_aliases,
    )(x_packed, pe_packed)

    return out_packed.reshape(B, S, D)


if __name__ == "__main__":
    key = jax.random.PRNGKey(0)
    k1, k2 = jax.random.split(key)

    # --- small shape consistent with the module: batch=2, seq=8, d_model=32 ---
    d_model, max_len, batch, seq = 32, 64, 2, 8
    pe = _build_pe(d_model, max_len)
    x = jax.random.normal(k1, (batch, seq, d_model), dtype=jnp.float32)

    ref = x + pe[:, :seq, :]
    out = jax.block_until_ready(positional_encoding_forward(x, pe))
    assert out.shape == (batch, seq, d_model)
    assert jnp.allclose(out, ref, atol=1e-6), "mismatch vs reference (test 1)"

    # --- second small test: forces the row-tiled, batch-broadcast, ragged path --
    d2, max2, b2, s2 = 32, 256, 3, 160
    pe2 = _build_pe(d2, max2)
    x2 = jax.random.normal(k2, (b2, s2, d2), dtype=jnp.float32)

    ref2 = x2 + pe2[:, :s2, :]
    out2 = jax.block_until_ready(
        positional_encoding_forward(x2, pe2, block_bytes=16 * 1024)
    )
    assert out2.shape == (b2, s2, d2)
    assert jnp.allclose(out2, ref2, atol=1e-6), "mismatch vs reference (test 2)"

    print("KERNEL_OK")
</pallas_src>

<mosaic_0001>
module attributes {stable_mosaic.version = 11 : i64} {
  func.func @_add_pe_kernel(%arg0: i32, %arg1: i32, %arg2: memref<2x1x256xf32, #tpu.memory_space<vmem>>, %arg3: memref<1x1x256xf32, #tpu.memory_space<vmem>>, %arg4: memref<2x1x256xf32, #tpu.memory_space<vmem>>) attributes {dimension_semantics = [#tpu.dimension_semantics<parallel>, #tpu.dimension_semantics<parallel>], iteration_bounds = array<i64: 1, 1>, scalar_prefetch = 0 : i64, scratch_operands = 0 : i64, tpu.core_type = #tpu.core_type<tc>, window_params = [{transform_indices = @transform_0, window_bounds = array<i64: 2, 1, 256>}, {transform_indices = @transform_1, window_bounds = array<i64: 1, 1, 256>}, {transform_indices = @transform_2, window_bounds = array<i64: 2, 1, 256>}]} {
    %c0 = arith.constant 0 : index
    %c0_0 = arith.constant 0 : index
    %c0_1 = arith.constant 0 : index
    %0 = vector.load %arg2[%c0, %c0_0, %c0_1] : memref<2x1x256xf32, #tpu.memory_space<vmem>>, vector<2x1x256xf32>
    %c0_2 = arith.constant 0 : index
    %c0_3 = arith.constant 0 : index
    %c0_4 = arith.constant 0 : index
    %1 = vector.load %arg3[%c0_2, %c0_3, %c0_4] : memref<1x1x256xf32, #tpu.memory_space<vmem>>, vector<1x1x256xf32>
    %2 = vector.broadcast %1 : vector<1x1x256xf32> to vector<2x1x256xf32>
    %3 = arith.addf %0, %2 : vector<2x1x256xf32>
    %c0_5 = arith.constant 0 : index
    %c0_6 = arith.constant 0 : index
    %c0_7 = arith.constant 0 : index
    %4 = vector.load %arg4[%c0_5, %c0_6, %c0_7] : memref<2x1x256xf32, #tpu.memory_space<vmem>>, vector<2x1x256xf32>
    tpu.vector_store %arg4[%c0_5, %c0_6, %c0_7], %3 {strides = array<i32>} : memref<2x1x256xf32, #tpu.memory_space<vmem>>, vector<2x1x256xf32>,
    return
  }
  func.func @transform_0(%arg0: i32, %arg1: i32) -> (i32, i32, i32) {
    %c0_i32 = arith.constant 0 : i32
    %c0_i32_0 = arith.constant 0 : i32
    return %arg1, %arg0, %c0_i32 : i32, i32, i32
  }
  func.func @transform_1(%arg0: i32, %arg1: i32) -> (i32, i32, i32) {
    %c0_i32 = arith.constant 0 : i32
    %c0_i32_0 = arith.constant 0 : i32
    %c0_i32_1 = arith.constant 0 : i32
    return %c0_i32, %arg0, %c0_i32_0 : i32, i32, i32
  }
  func.func @transform_2(%arg0: i32, %arg1: i32) -> (i32, i32, i32) {
    %c0_i32 = arith.constant 0 : i32
    %c0_i32_0 = arith.constant 0 : i32
    return %arg1, %arg0, %c0_i32 : i32, i32, i32
  }
}

</mosaic_0001>

<bundles_post_ra>
// kernel: tpu_custom_call.1
= control target key start
LH: loop header
LB: loop body
LE: loop exit
PB: predicated region body
PF: predicated region fallthrough
CT: control target
= control target key end

     0   :  { %7 = vsyncpa [#allocation3], 0  ;;  %s142_s0 = inlined_call_operand.hbm [shape: f32[2,1,256], index: 0, kind: input, shape index: {}, may-alias: {0,2}]   ;;  %s143_s1 = inlined_call_operand.vmem [shape: f32[1,1,256], index: 1, kind: input, shape index: {}]   ;;  %s144_s2 = inlined_call_operand.hbm [shape: f32[2,1,256], index: 2, kind: output, shape index: {}, may-alias: {0,2}]  }
   0x1   :  { %8 = vsyncpa [#allocation4], 0  ;;  %s13_s11 = sshll.u32 %s142_s0, 4  ;;  %s114_s12 = smov [#allocation2]   ;;  %s14_s11 = int_to_ptr.hbm [resolvable:$true] %s13_s11 }
   0x2   :  { %s15_s13 = sshll.u32 %s114_s12, 4  ;;  %s115_s14 = smov 32   ;;  %s16_s13 = int_to_ptr.vmem [resolvable:$true] %s15_s13 }
   0x3   :  { %s116_s15 = smov 2  }
   0x4   :  { %21 = dma.hbm_to_vmem [thread:$0]  %s14_s11, 64, %s16_s13, [#allocation3], %s115_s14, %s115_s14, %s116_s15  }
   0x5   :  { %110 = dma.done.wait [#allocation3], 64  }
   0x6   :  { %111 = vsyncadd [#allocation3], 4294967232  ;;  %v33_v0 = vlaneseq  ;;  %s117_s16 = smov [#allocation5]   ;;  %s45_s20 = sshll.u32 %s144_s2, 4  ;;  %v28_v1 = vld [vmem:[#allocation2] sm:$0x3]  ;;  %s46_s20 = int_to_ptr.hbm [resolvable:$true] %s45_s20 }
   0x7   :  { %s43_s17 = sshll.u32 %s117_s16, 4  ;;  %v30_v2 = vld [vmem:[%s143_s1] sm:$0x3]  ;;  %v29_v3 = vld [vmem:[#allocation2 + $0x2] sm:$0x3]  ;;  %s44_s17 = int_to_ptr.vmem [resolvable:$true] %s43_s17 }
   0x8   :  { %vm35_vm0 = vcmp.lt.s32.totalorder %v33_v0, 256  ;;  %v31_v4 = vadd.f32 %v30_v2, %v28_v1  ;;  %v32_v5 = vadd.f32 %v30_v2, %v29_v3 }
   0xa   :  { %37 = vst.msk [vmem:[#allocation5] sm:$0x3] %vm35_vm0, %v31_v4 }
   0xb   :  { %38 = vst.msk [vmem:[#allocation5 + $0x2] sm:$0x3] %vm35_vm0, %v32_v5 }
   0xc   :  { %51 = dma.vmem_to_hbm [thread:$0]  %s44_s17, 64, %s46_s20, [#allocation4], %s115_s14, %s115_s14, %s116_s15  }
   0xd   :  { %112 = dma.done.wait [#allocation4], 64  }
   0xe   :  { %113 = vsyncadd [#allocation4], 4294967232 }
   0xf   :  { %56 = vsyncpa [#allocation3], 1 }
  0x10   :  { %57 = vsyncpa [#allocation4], 1 }

</bundles_post_ra>
